<compile_context>
chip_gen: v6e
topology: v6e:2x2x1
jax: 0.10.0
libtpu: 0.0.40
codegen_flags: <defaults>
</compile_context>

<pallas_src>
import functools
import math

import jax
import jax.numpy as jnp
from jax.experimental import pallas as pl
from jax.experimental.pallas import tpu as pltpu


def _mha_kernel(q_ref, k_ref, v_ref, wqkv_ref, bqkv_ref, wc_ref, bc_ref,
                out_ref, qkv_scr, ctx_scr, *, n_head):
    _, L, D = q_ref.shape
    H = n_head
    d_t = D // H
    act_dtype = q_ref.dtype

    # --- Q/K/V projections: lane-dense (L, D) @ (D, D) matmuls, f32 accum.
    # The 1/sqrt(d_t) attention scale is already folded into wq/bq.
    for i, x_ref in enumerate((q_ref, k_ref, v_ref)):
        y = jnp.dot(x_ref[0], wqkv_ref[i],
                    preferred_element_type=jnp.float32) + bqkv_ref[i]
        qkv_scr[i] = y.astype(act_dtype)

    # --- Split heads: (L, D) -> (H, L, d_t) via static lane-sliced loads from
    # the projection scratch (pure data movement; matmuls stay MXU-wide).
    def heads(i):
        return jnp.stack(
            [qkv_scr[i, :, h * d_t:(h + 1) * d_t] for h in range(H)], axis=0)

    qh, kh, vh = heads(0), heads(1), heads(2)

    # --- Scores (H, L, L): head-batched contraction over d_t (no explicit k.T).
    s = jnp.einsum('hqd,hkd->hqk', qh, kh, preferred_element_type=jnp.float32)

    # --- Numerically-stable softmax over the key axis, in f32 (exact
    # reciprocal so the result tracks the PyTorch reference closely).
    s = s - jnp.max(s, axis=-1, keepdims=True)
    p = jnp.exp(s)
    p = p * pl.reciprocal(jnp.sum(p, axis=-1, keepdims=True))

    # --- Context (H, L, d_t).
    ctx = jnp.einsum('hqk,hkd->hqd', p.astype(act_dtype), vh,
                     preferred_element_type=jnp.float32).astype(act_dtype)

    # --- Merge heads back to a lane-dense (L, D) slab (static lane-sliced
    # stores), then a single (L, D) @ (D, D) output projection: the head
    # reduction is a full-K MXU contraction, not (H, L, D) f32 partials.
    for h in range(H):
        ctx_scr[:, h * d_t:(h + 1) * d_t] = ctx[h]

    out = jnp.dot(ctx_scr[...], wc_ref[...],
                  preferred_element_type=jnp.float32) + bc_ref[...]
    out_ref[0] = out.astype(out_ref.dtype)


def multi_head_attention(q, k, v, params, n_head, compute_dtype=None):
    """q, k, v: [B, L, D]. params: (wq, bq, wk, bk, wv, bv, wc, bc);
    weights are [d_in, d_out], biases are [1, d_out] (x @ W + b == nn.Linear)."""
    wq, bq, wk, bk, wv, bv, wc, bc = params
    B, L, D = q.shape
    assert D % n_head == 0, "d_model must be divisible by n_head"
    d_t = D // n_head
    out_dtype = q.dtype

    # Trace-time (XLA-side) layout/dtype plumbing, outside the kernel:
    #  * fold the attention scale into the q projection weights + bias,
    #  * fuse the three projection weights/biases into stacked operands,
    #  * optionally cast MXU operands to bf16 (biases stay f32: they are added
    #    to the f32 accumulation).
    scale = 1.0 / math.sqrt(d_t)
    wqkv = jnp.stack([wq * scale, wk, wv], axis=0)            # (3, D, D)
    bqkv = jnp.stack([bq * scale, bk, bv], axis=0)            # (3, 1, D)

    if compute_dtype is not None:
        q, k, v = (t.astype(compute_dtype) for t in (q, k, v))
        wqkv = wqkv.astype(compute_dtype)
        wc = wc.astype(compute_dtype)
    act_dtype = q.dtype

    kernel = functools.partial(_mha_kernel, n_head=n_head)
    qkv_spec = pl.BlockSpec((1, L, D), lambda b: (b, 0, 0))

    return pl.pallas_call(
        kernel,
        out_shape=jax.ShapeDtypeStruct((B, L, D), out_dtype),
        grid=(B,),
        in_specs=[qkv_spec, qkv_spec, qkv_spec,
                  pl.BlockSpec((3, D, D), lambda b: (0, 0, 0)),
                  pl.BlockSpec((3, 1, D), lambda b: (0, 0, 0)),
                  pl.BlockSpec((D, D), lambda b: (0, 0)),
                  pl.BlockSpec((1, D), lambda b: (0, 0))],
        out_specs=qkv_spec,
        scratch_shapes=[pltpu.VMEM((3, L, D), act_dtype),
                        pltpu.VMEM((L, D), act_dtype)],
        compiler_params=pltpu.CompilerParams(
            dimension_semantics=("parallel",)),
    )(q, k, v, wqkv, bqkv, wc, bc)


def reference_mha(q, k, v, params, n_head):
    """Pure-JAX reference mirroring the PyTorch module."""
    wq, bq, wk, bk, wv, bv, wc, bc = params
    B, L, D = q.shape
    d_tensor = D // n_head

    def proj(x, w, b):
        return x @ w + b

    def split(t):
        return t.reshape(B, L, n_head, d_tensor).transpose(0, 2, 1, 3)

    qp, kp, vp = proj(q, wq, bq), proj(k, wk, bk), proj(v, wv, bv)
    qh, kh, vh = split(qp), split(kp), split(vp)
    score = jnp.einsum('bhqd,bhkd->bhqk', qh, kh) / math.sqrt(d_tensor)
    score = jax.nn.softmax(score, axis=-1)
    out = jnp.einsum('bhqk,bhkd->bhqd', score, vh)
    out = out.transpose(0, 2, 1, 3).reshape(B, L, D)
    return out @ wc + bc


if __name__ == "__main__":
    # Small shapes consistent with the module's forward pass.
    B, L, D = 2, 8, 32
    n_head = 4

    key = jax.random.PRNGKey(0)
    ks = jax.random.split(key, 16)

    q = jax.random.normal(ks[0], (B, L, D), dtype=jnp.float32)
    k = jax.random.normal(ks[1], (B, L, D), dtype=jnp.float32)
    v = jax.random.normal(ks[2], (B, L, D), dtype=jnp.float32)

    # Deterministic synthetic parameters (nn.Linear-style small uniform init).
    bound = 1.0 / math.sqrt(D)

    def lin(kw, kb):
        w = jax.random.uniform(kw, (D, D), jnp.float32, -bound, bound)
        b = jax.random.uniform(kb, (1, D), jnp.float32, -bound, bound)
        return w, b

    wq, bq = lin(ks[3], ks[4])
    wk, bk = lin(ks[5], ks[6])
    wv, bv = lin(ks[7], ks[8])
    wc, bc = lin(ks[9], ks[10])
    params = (wq, bq, wk, bk, wv, bv, wc, bc)

    out = multi_head_attention(q, k, v, params, n_head)
    out = jax.block_until_ready(out)

    ref = reference_mha(q, k, v, params, n_head)
    assert out.shape == (B, L, D)
    # MXU f32 matmuls use multi-pass bf16 internally -> small tolerance.
    assert jnp.allclose(out, ref, atol=5e-3, rtol=5e-3), "mismatch vs reference"

    print("KERNEL_OK")
</pallas_src>

<mosaic_0001>
module attributes {stable_mosaic.version = 11 : i64} {
  func.func @_mha_kernel(%arg0: i32, %arg1: memref<1x8x32xf32, #tpu.memory_space<vmem>>, %arg2: memref<1x8x32xf32, #tpu.memory_space<vmem>>, %arg3: memref<1x8x32xf32, #tpu.memory_space<vmem>>, %arg4: memref<3x32x32xf32, #tpu.memory_space<vmem>>, %arg5: memref<3x1x32xf32, #tpu.memory_space<vmem>>, %arg6: memref<32x32xf32, #tpu.memory_space<vmem>>, %arg7: memref<1x32xf32, #tpu.memory_space<vmem>>, %arg8: memref<1x8x32xf32, #tpu.memory_space<vmem>>, %arg9: memref<3x8x32xf32, #tpu.memory_space<vmem>>, %arg10: memref<8x32xf32, #tpu.memory_space<vmem>>) attributes {dimension_semantics = [#tpu.dimension_semantics<parallel>], iteration_bounds = array<i64: 2>, scalar_prefetch = 0 : i64, scratch_operands = 2 : i64, tpu.core_type = #tpu.core_type<tc>, window_params = [{transform_indices = @transform_0, window_bounds = array<i64: 1, 8, 32>}, {transform_indices = @transform_1, window_bounds = array<i64: 1, 8, 32>}, {transform_indices = @transform_2, window_bounds = array<i64: 1, 8, 32>}, {pipeline_mode = #tpu.pipeline_mode<synchronous>, transform_indices = @transform_3, window_bounds = array<i64: 3, 32, 32>}, {pipeline_mode = #tpu.pipeline_mode<synchronous>, transform_indices = @transform_4, window_bounds = array<i64: 3, 1, 32>}, {pipeline_mode = #tpu.pipeline_mode<synchronous>, transform_indices = @transform_5, window_bounds = array<i64: 32, 32>}, {pipeline_mode = #tpu.pipeline_mode<synchronous>, transform_indices = @transform_6, window_bounds = array<i64: 1, 32>}, {transform_indices = @transform_7, window_bounds = array<i64: 1, 8, 32>}]} {
    %c0 = arith.constant 0 : index
    %c0_0 = arith.constant 0 : index
    %c0_1 = arith.constant 0 : index
    %0 = vector.load %arg1[%c0, %c0_0, %c0_1] : memref<1x8x32xf32, #tpu.memory_space<vmem>>, vector<1x8x32xf32>
    %1 = vector.shape_cast %0 : vector<1x8x32xf32> to vector<8x32xf32>
    %c0_2 = arith.constant 0 : index
    %c0_3 = arith.constant 0 : index
    %c0_4 = arith.constant 0 : index
    %2 = vector.load %arg4[%c0_2, %c0_3, %c0_4] : memref<3x32x32xf32, #tpu.memory_space<vmem>>, vector<1x32x32xf32>
    %3 = vector.shape_cast %2 : vector<1x32x32xf32> to vector<32x32xf32>
    %cst = arith.constant dense<0.000000e+00> : vector<8x32xf32>
    %4 = tpu.matmul %1, %3, %cst {dimension_numbers = #tpu.dot_dimension_numbers<[1], [0], [0], [1], [0, 0, 1, 1], [], []>} : vector<8x32xf32>, vector<32x32xf32>, vector<8x32xf32> -> vector<8x32xf32>
    %c0_5 = arith.constant 0 : index
    %c0_6 = arith.constant 0 : index
    %c0_7 = arith.constant 0 : index
    %5 = vector.load %arg5[%c0_5, %c0_6, %c0_7] : memref<3x1x32xf32, #tpu.memory_space<vmem>>, vector<1x1x32xf32>
    %6 = vector.shape_cast %5 : vector<1x1x32xf32> to vector<1x32xf32>
    %7 = vector.broadcast %6 : vector<1x32xf32> to vector<8x32xf32>
    %8 = arith.addf %4, %7 : vector<8x32xf32>
    %c0_8 = arith.constant 0 : index
    %c0_9 = arith.constant 0 : index
    %c0_10 = arith.constant 0 : index
    %9 = vector.load %arg9[%c0_8, %c0_9, %c0_10] : memref<3x8x32xf32, #tpu.memory_space<vmem>>, vector<1x8x32xf32>
    %10 = vector.shape_cast %9 : vector<1x8x32xf32> to vector<8x32xf32>
    %11 = vector.shape_cast %8 : vector<8x32xf32> to vector<1x8x32xf32>
    tpu.vector_store %arg9[%c0_8, %c0_9, %c0_10], %11 {strides = array<i32>} : memref<3x8x32xf32, #tpu.memory_space<vmem>>, vector<1x8x32xf32>,
    %c0_11 = arith.constant 0 : index
    %c0_12 = arith.constant 0 : index
    %c0_13 = arith.constant 0 : index
    %12 = vector.load %arg2[%c0_11, %c0_12, %c0_13] : memref<1x8x32xf32, #tpu.memory_space<vmem>>, vector<1x8x32xf32>
    %13 = vector.shape_cast %12 : vector<1x8x32xf32> to vector<8x32xf32>
    %c1 = arith.constant 1 : index
    %c0_14 = arith.constant 0 : index
    %c0_15 = arith.constant 0 : index
    %14 = vector.load %arg4[%c1, %c0_14, %c0_15] : memref<3x32x32xf32, #tpu.memory_space<vmem>>, vector<1x32x32xf32>
    %15 = vector.shape_cast %14 : vector<1x32x32xf32> to vector<32x32xf32>
    %cst_16 = arith.constant dense<0.000000e+00> : vector<8x32xf32>
    %16 = tpu.matmul %13, %15, %cst_16 {dimension_numbers = #tpu.dot_dimension_numbers<[1], [0], [0], [1], [0, 0, 1, 1], [], []>} : vector<8x32xf32>, vector<32x32xf32>, vector<8x32xf32> -> vector<8x32xf32>
    %c1_17 = arith.constant 1 : index
    %c0_18 = arith.constant 0 : index
    %c0_19 = arith.constant 0 : index
    %17 = vector.load %arg5[%c1_17, %c0_18, %c0_19] : memref<3x1x32xf32, #tpu.memory_space<vmem>>, vector<1x1x32xf32>
    %18 = vector.shape_cast %17 : vector<1x1x32xf32> to vector<1x32xf32>
    %19 = vector.broadcast %18 : vector<1x32xf32> to vector<8x32xf32>
    %20 = arith.addf %16, %19 : vector<8x32xf32>
    %c1_20 = arith.constant 1 : index
    %c0_21 = arith.constant 0 : index
    %c0_22 = arith.constant 0 : index
    %21 = vector.load %arg9[%c1_20, %c0_21, %c0_22] : memref<3x8x32xf32, #tpu.memory_space<vmem>>, vector<1x8x32xf32>
    %22 = vector.shape_cast %21 : vector<1x8x32xf32> to vector<8x32xf32>
    %23 = vector.shape_cast %20 : vector<8x32xf32> to vector<1x8x32xf32>
    tpu.vector_store %arg9[%c1_20, %c0_21, %c0_22], %23 {strides = array<i32>} : memref<3x8x32xf32, #tpu.memory_space<vmem>>, vector<1x8x32xf32>,
    %c0_23 = arith.constant 0 : index
    %c0_24 = arith.constant 0 : index
    %c0_25 = arith.constant 0 : index
    %24 = vector.load %arg3[%c0_23, %c0_24, %c0_25] : memref<1x8x32xf32, #tpu.memory_space<vmem>>, vector<1x8x32xf32>
    %25 = vector.shape_cast %24 : vector<1x8x32xf32> to vector<8x32xf32>
    %c2 = arith.constant 2 : index
    %c0_26 = arith.constant 0 : index
    %c0_27 = arith.constant 0 : index
    %26 = vector.load %arg4[%c2, %c0_26, %c0_27] : memref<3x32x32xf32, #tpu.memory_space<vmem>>, vector<1x32x32xf32>
    %27 = vector.shape_cast %26 : vector<1x32x32xf32> to vector<32x32xf32>
    %cst_28 = arith.constant dense<0.000000e+00> : vector<8x32xf32>
    %28 = tpu.matmul %25, %27, %cst_28 {dimension_numbers = #tpu.dot_dimension_numbers<[1], [0], [0], [1], [0, 0, 1, 1], [], []>} : vector<8x32xf32>, vector<32x32xf32>, vector<8x32xf32> -> vector<8x32xf32>
    %c2_29 = arith.constant 2 : index
    %c0_30 = arith.constant 0 : index
    %c0_31 = arith.constant 0 : index
    %29 = vector.load %arg5[%c2_29, %c0_30, %c0_31] : memref<3x1x32xf32, #tpu.memory_space<vmem>>, vector<1x1x32xf32>
    %30 = vector.shape_cast %29 : vector<1x1x32xf32> to vector<1x32xf32>
    %31 = vector.broadcast %30 : vector<1x32xf32> to vector<8x32xf32>
    %32 = arith.addf %28, %31 : vector<8x32xf32>
    %c2_32 = arith.constant 2 : index
    %c0_33 = arith.constant 0 : index
    %c0_34 = arith.constant 0 : index
    %33 = vector.load %arg9[%c2_32, %c0_33, %c0_34] : memref<3x8x32xf32, #tpu.memory_space<vmem>>, vector<1x8x32xf32>
    %34 = vector.shape_cast %33 : vector<1x8x32xf32> to vector<8x32xf32>
    %35 = vector.shape_cast %32 : vector<8x32xf32> to vector<1x8x32xf32>
    tpu.vector_store %arg9[%c2_32, %c0_33, %c0_34], %35 {strides = array<i32>} : memref<3x8x32xf32, #tpu.memory_space<vmem>>, vector<1x8x32xf32>,
    %c0_35 = arith.constant 0 : index
    %c0_36 = arith.constant 0 : index
    %c0_37 = arith.constant 0 : index
    %36 = vector.load %arg9[%c0_35, %c0_36, %c0_37] : memref<3x8x32xf32, #tpu.memory_space<vmem>>, vector<1x8x8xf32>
    %37 = vector.shape_cast %36 : vector<1x8x8xf32> to vector<8x8xf32>
    %c0_38 = arith.constant 0 : index
    %c0_39 = arith.constant 0 : index
    %c8 = arith.constant 8 : index
    %38 = vector.load %arg9[%c0_38, %c0_39, %c8] : memref<3x8x32xf32, #tpu.memory_space<vmem>>, vector<1x8x8xf32>
    %39 = vector.shape_cast %38 : vector<1x8x8xf32> to vector<8x8xf32>
    %c0_40 = arith.constant 0 : index
    %c0_41 = arith.constant 0 : index
    %c16 = arith.constant 16 : index
    %40 = vector.load %arg9[%c0_40, %c0_41, %c16] : memref<3x8x32xf32, #tpu.memory_space<vmem>>, vector<1x8x8xf32>
    %41 = vector.shape_cast %40 : vector<1x8x8xf32> to vector<8x8xf32>
    %c0_42 = arith.constant 0 : index
    %c0_43 = arith.constant 0 : index
    %c24 = arith.constant 24 : index
    %42 = vector.load %arg9[%c0_42, %c0_43, %c24] : memref<3x8x32xf32, #tpu.memory_space<vmem>>, vector<1x8x8xf32>
    %43 = vector.shape_cast %42 : vector<1x8x8xf32> to vector<8x8xf32>
    %44 = vector.shape_cast %37 : vector<8x8xf32> to vector<1x8x8xf32>
    %45 = vector.shape_cast %39 : vector<8x8xf32> to vector<1x8x8xf32>
    %46 = vector.shape_cast %41 : vector<8x8xf32> to vector<1x8x8xf32>
    %47 = vector.shape_cast %43 : vector<8x8xf32> to vector<1x8x8xf32>
    %48 = tpu.concatenate %44, %45, %46, %47 in 0 : vector<1x8x8xf32>, vector<1x8x8xf32>, vector<1x8x8xf32>, vector<1x8x8xf32> -> vector<4x8x8xf32>
    %c1_44 = arith.constant 1 : index
    %c0_45 = arith.constant 0 : index
    %c0_46 = arith.constant 0 : index
    %49 = vector.load %arg9[%c1_44, %c0_45, %c0_46] : memref<3x8x32xf32, #tpu.memory_space<vmem>>, vector<1x8x8xf32>
    %50 = vector.shape_cast %49 : vector<1x8x8xf32> to vector<8x8xf32>
    %c1_47 = arith.constant 1 : index
    %c0_48 = arith.constant 0 : index
    %c8_49 = arith.constant 8 : index
    %51 = vector.load %arg9[%c1_47, %c0_48, %c8_49] : memref<3x8x32xf32, #tpu.memory_space<vmem>>, vector<1x8x8xf32>
    %52 = vector.shape_cast %51 : vector<1x8x8xf32> to vector<8x8xf32>
    %c1_50 = arith.constant 1 : index
    %c0_51 = arith.constant 0 : index
    %c16_52 = arith.constant 16 : index
    %53 = vector.load %arg9[%c1_50, %c0_51, %c16_52] : memref<3x8x32xf32, #tpu.memory_space<vmem>>, vector<1x8x8xf32>
    %54 = vector.shape_cast %53 : vector<1x8x8xf32> to vector<8x8xf32>
    %c1_53 = arith.constant 1 : index
    %c0_54 = arith.constant 0 : index
    %c24_55 = arith.constant 24 : index
    %55 = vector.load %arg9[%c1_53, %c0_54, %c24_55] : memref<3x8x32xf32, #tpu.memory_space<vmem>>, vector<1x8x8xf32>
    %56 = vector.shape_cast %55 : vector<1x8x8xf32> to vector<8x8xf32>
    %57 = vector.shape_cast %50 : vector<8x8xf32> to vector<1x8x8xf32>
    %58 = vector.shape_cast %52 : vector<8x8xf32> to vector<1x8x8xf32>
    %59 = vector.shape_cast %54 : vector<8x8xf32> to vector<1x8x8xf32>
    %60 = vector.shape_cast %56 : vector<8x8xf32> to vector<1x8x8xf32>
    %61 = tpu.concatenate %57, %58, %59, %60 in 0 : vector<1x8x8xf32>, vector<1x8x8xf32>, vector<1x8x8xf32>, vector<1x8x8xf32> -> vector<4x8x8xf32>
    %c2_56 = arith.constant 2 : index
    %c0_57 = arith.constant 0 : index
    %c0_58 = arith.constant 0 : index
    %62 = vector.load %arg9[%c2_56, %c0_57, %c0_58] : memref<3x8x32xf32, #tpu.memory_space<vmem>>, vector<1x8x8xf32>
    %63 = vector.shape_cast %62 : vector<1x8x8xf32> to vector<8x8xf32>
    %c2_59 = arith.constant 2 : index
    %c0_60 = arith.constant 0 : index
    %c8_61 = arith.constant 8 : index
    %64 = vector.load %arg9[%c2_59, %c0_60, %c8_61] : memref<3x8x32xf32, #tpu.memory_space<vmem>>, vector<1x8x8xf32>
    %65 = vector.shape_cast %64 : vector<1x8x8xf32> to vector<8x8xf32>
    %c2_62 = arith.constant 2 : index
    %c0_63 = arith.constant 0 : index
    %c16_64 = arith.constant 16 : index
    %66 = vector.load %arg9[%c2_62, %c0_63, %c16_64] : memref<3x8x32xf32, #tpu.memory_space<vmem>>, vector<1x8x8xf32>
    %67 = vector.shape_cast %66 : vector<1x8x8xf32> to vector<8x8xf32>
    %c2_65 = arith.constant 2 : index
    %c0_66 = arith.constant 0 : index
    %c24_67 = arith.constant 24 : index
    %68 = vector.load %arg9[%c2_65, %c0_66, %c24_67] : memref<3x8x32xf32, #tpu.memory_space<vmem>>, vector<1x8x8xf32>
    %69 = vector.shape_cast %68 : vector<1x8x8xf32> to vector<8x8xf32>
    %70 = vector.shape_cast %63 : vector<8x8xf32> to vector<1x8x8xf32>
    %71 = vector.shape_cast %65 : vector<8x8xf32> to vector<1x8x8xf32>
    %72 = vector.shape_cast %67 : vector<8x8xf32> to vector<1x8x8xf32>
    %73 = vector.shape_cast %69 : vector<8x8xf32> to vector<1x8x8xf32>
    %74 = tpu.concatenate %70, %71, %72, %73 in 0 : vector<1x8x8xf32>, vector<1x8x8xf32>, vector<1x8x8xf32>, vector<1x8x8xf32> -> vector<4x8x8xf32>
    "tpu.trace_start"() <{level = 10 : i32, message = "hqd,hkd->hqk"}> : () -> ()
    %cst_68 = arith.constant dense<0.000000e+00> : vector<4x8x8xf32>
    %75 = tpu.matmul %48, %61, %cst_68 {dimension_numbers = #tpu.dot_dimension_numbers<[2], [2], [1], [1], [0, 0, 0, 1, 1, 1], [0], [0]>} : vector<4x8x8xf32>, vector<4x8x8xf32>, vector<4x8x8xf32> -> vector<4x8x8xf32>
    "tpu.trace_stop"() : () -> ()
    %cst_69 = arith.constant dense<0xFF800000> : vector<4x8xf32>
    %76 = vector.multi_reduction <maximumf>, %75, %cst_69 [2] : vector<4x8x8xf32> to vector<4x8xf32>
    %77 = vector.shape_cast %76 : vector<4x8xf32> to vector<4x8x1xf32>
    %78 = vector.broadcast %77 : vector<4x8x1xf32> to vector<4x8x8xf32>
    %79 = arith.subf %75, %78 : vector<4x8x8xf32>
    %80 = math.exp %79 : vector<4x8x8xf32>
    %cst_70 = arith.constant dense<0.000000e+00> : vector<4x8xf32>
    %81 = vector.multi_reduction <add>, %80, %cst_70 [2] : vector<4x8x8xf32> to vector<4x8xf32>
    %82 = vector.shape_cast %81 : vector<4x8xf32> to vector<4x8x1xf32>
    %83 = tpu.reciprocal %82 : vector<4x8x1xf32> -> vector<4x8x1xf32>
    %84 = vector.broadcast %83 : vector<4x8x1xf32> to vector<4x8x8xf32>
    %85 = arith.mulf %80, %84 : vector<4x8x8xf32>
    "tpu.trace_start"() <{level = 10 : i32, message = "hqk,hkd->hqd"}> : () -> ()
    %cst_71 = arith.constant dense<0.000000e+00> : vector<4x8x8xf32>
    %86 = tpu.matmul %85, %74, %cst_71 {dimension_numbers = #tpu.dot_dimension_numbers<[2], [1], [1], [2], [0, 0, 0, 1, 1, 2], [0], [0]>} : vector<4x8x8xf32>, vector<4x8x8xf32>, vector<4x8x8xf32> -> vector<4x8x8xf32>
    "tpu.trace_stop"() : () -> ()
    %87 = vector.extract_strided_slice %86 {offsets = [0, 0, 0], sizes = [1, 8, 8], strides = [1, 1, 1]} : vector<4x8x8xf32> to vector<1x8x8xf32>
    %88 = vector.shape_cast %87 : vector<1x8x8xf32> to vector<8x8xf32>
    %c0_72 = arith.constant 0 : index
    %c0_73 = arith.constant 0 : index
    %89 = vector.load %arg10[%c0_72, %c0_73] : memref<8x32xf32, #tpu.memory_space<vmem>>, vector<8x8xf32>
    tpu.vector_store %arg10[%c0_72, %c0_73], %88 {strides = array<i32>} : memref<8x32xf32, #tpu.memory_space<vmem>>, vector<8x8xf32>,
    %90 = vector.extract_strided_slice %86 {offsets = [1, 0, 0], sizes = [1, 8, 8], strides = [1, 1, 1]} : vector<4x8x8xf32> to vector<1x8x8xf32>
    %91 = vector.shape_cast %90 : vector<1x8x8xf32> to vector<8x8xf32>
    %c0_74 = arith.constant 0 : index
    %c8_75 = arith.constant 8 : index
    %92 = vector.load %arg10[%c0_74, %c8_75] : memref<8x32xf32, #tpu.memory_space<vmem>>, vector<8x8xf32>
    tpu.vector_store %arg10[%c0_74, %c8_75], %91 {strides = array<i32>} : memref<8x32xf32, #tpu.memory_space<vmem>>, vector<8x8xf32>,
    %93 = vector.extract_strided_slice %86 {offsets = [2, 0, 0], sizes = [1, 8, 8], strides = [1, 1, 1]} : vector<4x8x8xf32> to vector<1x8x8xf32>
    %94 = vector.shape_cast %93 : vector<1x8x8xf32> to vector<8x8xf32>
    %c0_76 = arith.constant 0 : index
    %c16_77 = arith.constant 16 : index
    %95 = vector.load %arg10[%c0_76, %c16_77] : memref<8x32xf32, #tpu.memory_space<vmem>>, vector<8x8xf32>
    tpu.vector_store %arg10[%c0_76, %c16_77], %94 {strides = array<i32>} : memref<8x32xf32, #tpu.memory_space<vmem>>, vector<8x8xf32>,
    %96 = vector.extract_strided_slice %86 {offsets = [3, 0, 0], sizes = [1, 8, 8], strides = [1, 1, 1]} : vector<4x8x8xf32> to vector<1x8x8xf32>
    %97 = vector.shape_cast %96 : vector<1x8x8xf32> to vector<8x8xf32>
    %c0_78 = arith.constant 0 : index
    %c24_79 = arith.constant 24 : index
    %98 = vector.load %arg10[%c0_78, %c24_79] : memref<8x32xf32, #tpu.memory_space<vmem>>, vector<8x8xf32>
    tpu.vector_store %arg10[%c0_78, %c24_79], %97 {strides = array<i32>} : memref<8x32xf32, #tpu.memory_space<vmem>>, vector<8x8xf32>,
    %c0_80 = arith.constant 0 : index
    %c0_81 = arith.constant 0 : index
    %99 = vector.load %arg10[%c0_80, %c0_81] : memref<8x32xf32, #tpu.memory_space<vmem>>, vector<8x32xf32>
    %c0_82 = arith.constant 0 : index
    %c0_83 = arith.constant 0 : index
    %100 = vector.load %arg6[%c0_82, %c0_83] : memref<32x32xf32, #tpu.memory_space<vmem>>, vector<32x32xf32>
    %cst_84 = arith.constant dense<0.000000e+00> : vector<8x32xf32>
    %101 = tpu.matmul %99, %100, %cst_84 {dimension_numbers = #tpu.dot_dimension_numbers<[1], [0], [0], [1], [0, 0, 1, 1], [], []>} : vector<8x32xf32>, vector<32x32xf32>, vector<8x32xf32> -> vector<8x32xf32>
    %c0_85 = arith.constant 0 : index
    %c0_86 = arith.constant 0 : index
    %102 = vector.load %arg7[%c0_85, %c0_86] : memref<1x32xf32, #tpu.memory_space<vmem>>, vector<1x32xf32>
    %103 = vector.broadcast %102 : vector<1x32xf32> to vector<8x32xf32>
    %104 = arith.addf %101, %103 : vector<8x32xf32>
    %c0_87 = arith.constant 0 : index
    %c0_88 = arith.constant 0 : index
    %c0_89 = arith.constant 0 : index
    %105 = vector.load %arg8[%c0_87, %c0_88, %c0_89] : memref<1x8x32xf32, #tpu.memory_space<vmem>>, vector<1x8x32xf32>
    %106 = vector.shape_cast %105 : vector<1x8x32xf32> to vector<8x32xf32>
    %107 = vector.shape_cast %104 : vector<8x32xf32> to vector<1x8x32xf32>
    tpu.vector_store %arg8[%c0_87, %c0_88, %c0_89], %107 {strides = array<i32>} : memref<1x8x32xf32, #tpu.memory_space<vmem>>, vector<1x8x32xf32>,
    return
  }
  func.func @transform_0(%arg0: i32) -> (i32, i32, i32) {
    %c0_i32 = arith.constant 0 : i32
    %c0_i32_0 = arith.constant 0 : i32
    %c0_i32_1 = arith.constant 0 : i32
    return %arg0, %c0_i32, %c0_i32_0 : i32, i32, i32
  }
  func.func @transform_1(%arg0: i32) -> (i32, i32, i32) {
    %c0_i32 = arith.constant 0 : i32
    %c0_i32_0 = arith.constant 0 : i32
    %c0_i32_1 = arith.constant 0 : i32
    return %arg0, %c0_i32, %c0_i32_0 : i32, i32, i32
  }
  func.func @transform_2(%arg0: i32) -> (i32, i32, i32) {
    %c0_i32 = arith.constant 0 : i32
    %c0_i32_0 = arith.constant 0 : i32
    %c0_i32_1 = arith.constant 0 : i32
    return %arg0, %c0_i32, %c0_i32_0 : i32, i32, i32
  }
  func.func @transform_3(%arg0: i32) -> (i32, i32, i32) {
    %c0_i32 = arith.constant 0 : i32
    %c0_i32_0 = arith.constant 0 : i32
    %c0_i32_1 = arith.constant 0 : i32
    %c0_i32_2 = arith.constant 0 : i32
    return %c0_i32, %c0_i32_0, %c0_i32_1 : i32, i32, i32
  }
  func.func @transform_4(%arg0: i32) -> (i32, i32, i32) {
    %c0_i32 = arith.constant 0 : i32
    %c0_i32_0 = arith.constant 0 : i32
    %c0_i32_1 = arith.constant 0 : i32
    %c0_i32_2 = arith.constant 0 : i32
    return %c0_i32, %c0_i32_0, %c0_i32_1 : i32, i32, i32
  }
  func.func @transform_5(%arg0: i32) -> (i32, i32) {
    %c0_i32 = arith.constant 0 : i32
    %c0_i32_0 = arith.constant 0 : i32
    %c0_i32_1 = arith.constant 0 : i32
    return %c0_i32, %c0_i32_0 : i32, i32
  }
  func.func @transform_6(%arg0: i32) -> (i32, i32) {
    %c0_i32 = arith.constant 0 : i32
    %c0_i32_0 = arith.constant 0 : i32
    %c0_i32_1 = arith.constant 0 : i32
    return %c0_i32, %c0_i32_0 : i32, i32
  }
  func.func @transform_7(%arg0: i32) -> (i32, i32, i32) {
    %c0_i32 = arith.constant 0 : i32
    %c0_i32_0 = arith.constant 0 : i32
    %c0_i32_1 = arith.constant 0 : i32
    return %arg0, %c0_i32, %c0_i32_0 : i32, i32, i32
  }
}

</mosaic_0001>

<bundles_post_ra>
// kernel: tpu_custom_call.1
= control target key start
LH: loop header
LB: loop body
LE: loop exit
PB: predicated region body
PF: predicated region fallthrough
CT: control target
= control target key end

     0   :  { %s2458_s0 = inlined_call_operand.hbm [shape: f32[2,8,32], index: 0, kind: input, shape index: {}]   ;;  %s2459_s1 = inlined_call_operand.hbm [shape: f32[2,8,32], index: 1, kind: input, shape index: {}]   ;;  %s2460_s2 = inlined_call_operand.hbm [shape: f32[2,8,32], index: 2, kind: input, shape index: {}]   ;;  %s2461_s3 = inlined_call_operand.hbm [shape: f32[3,32,32], index: 3, kind: input, shape index: {}]   ;;  %s2462_s4 = inlined_call_operand.vmem [shape: f32[3,1,32], index: 4, kind: input, shape index: {}]   ;;  %s2463_s5 = inlined_call_operand.hbm [shape: f32[32,32], index: 5, kind: input, shape index: {}]   ;;  %s2464_s6 = inlined_call_operand.vmem [shape: f32[1,32], index: 6, kind: input, shape index: {}]   ;;  %s2465_s7 = inlined_call_operand.hbm [shape: f32[2,8,32], index: 7, kind: output, shape index: {}]  }
   0x1   :  { %2481 = sst [smem:[#allocation23_spill]] %s2458_s0 }
   0x2   :  { %2482 = sst [smem:[#allocation24_spill]] %s2461_s3 }
   0x3   :  { %12 = vsyncpa [#allocation5], 0 }
   0x4   :  { %14 = vsyncpa [#allocation5 + $0x1], 0 }
   0x5   :  { %15 = vsyncpa [#allocation8], 0 }
   0x6   :  { %17 = vsyncpa [#allocation8 + $0x1], 0 }
   0x7   :  { %18 = vsyncpa [#allocation11], 0 }
   0x8   :  { %19 = vsyncpa [#allocation6], 0 }
   0x9   :  { %21 = vsyncpa [#allocation6 + $0x1], 0  ;;  %s2103_s24 = smov 0   ;;  %s2105_s25 = smov 0  }
   0xa   :  { %s2107_s26 = smov 0   ;;  %s2109_s27 = smov 0  }
   0xb LB: > { %2483 = sst [smem:[#allocation18_spill]] %s2033_s24  ;;  %s2124_s28 = sadd.s32 4294967295, %s2045_s27   ;;  %s2045_s27 = sphi %s2109_s27, %s2512_s27   ;;  %s2041_s26 = sphi %s2107_s26, %s2516_s26   ;;  %s2037_s25 = sphi %s2105_s25, %s2515_s25   ;;  %s2033_s24 = sphi %s2103_s24, %s2514_s24  }
   0xc   : > { %2484 = sst [smem:[#allocation19_spill]] %s2045_s27  ;;  %s1570_s29 = sadd.s32 4294967294, %s2045_s27  }
   0xd   : > { %p47_p0 = scmp.ne.s32.totalorder %s2037_s25, %s2033_s24  ;;  %p2471_p1 = scmp.eq.s32.totalorder %s2124_s28, 0 }
   0xe   : > { %p207_p2 = scmp.eq.s32.totalorder %s2124_s28, 1  ;;  %p213_p3 = scmp.eq.s32.totalorder %s1570_s29, 1 }
   0xf   : > { %p2133_p4 = por %p2471_p1, %p47_p0  ;;  %p1571_p5 = scmp.ge.s32.totalorder %s2045_s27, 1 }
  0x10   : > { %p2138_p6 = por %p213_p3, %p47_p0  ;;  %p220_p7 = scmp.lt.s32.totalorder %s2045_s27, 3 }
  0x11   : > { %s2485_s30 = scalar_select %p2133_p4, 1, 0 }
  0x12   : > { %s2486_s8 = scalar_select %p2138_p6, 1, 0 }
  0x13   : > { %p2143_p8 = pnand %p1571_p5, %p220_p7  ;;  %s2047_s10 = smov [#allocation10]  }
  0x14   : > { %2487 = sst [smem:[#allocation20_spill]] %s2486_s8  ;;  %s232_s11 = sshll.u32 %s2047_s10, 4  ;;  %s233_s11 = int_to_ptr.vmem [resolvable:$true] %s232_s11 }
  0x15   : > { %s2488_s9 = scalar_select %p2143_p8, 1, 0 }
  0x16   : > { %p1750_p9 = pneg %p2143_p8  ;;  %s2157_s13 = sadd.s32 1, %s2045_s27  }
  0x17   : > { %2490 = sst [smem:[#allocation21_spill]] %s2157_s13  ;;  %s34_s14 = sadd.s32 1, %s2041_s26 }
  0x18   : > { %p2152_p11 = pnand %p1750_p9, %p2471_p1  ;;  %s31_s15 = ssub.s32 %s2045_s27, %s2157_s13 }
  0x19   : > { %s1848_s16 = scalar_lea.vmem %s233_s11, 1536  ;;  %p1856_p5 = scmp.lt.s32.totalorder %s233_s11, %s233_s11 }
  0x1a   : > { %s2489_s12 = scalar_select %p2152_p11, 1, 0 }
  0x1b   : > { %p2472_p12 = pneg %p2152_p11  ;;  %p1849_p13 = scmp.ne.s32.totalorder %s233_s11, %s1848_s16 }
  0x1c   : > { %p1857_p7 = scmp.lt.s32.totalorder %s1848_s16, %s1848_s16 }
  0x1d   : > { %p1851_p0 = pnand %p1849_p13, %p2472_p12 }
  0x1e   : > { %p1858_p9 = por %p1857_p7, %p1856_p5 }
  0x1f   : > { %p1852_p3 = pneg %p1851_p0 }
  0x21   : > { %p1859_p10 = pnand %p1858_p9, %p1852_p3 }
  0x23   : > { %1862 = shalt.err (!%p1859_p10)
}
  0x24   : > { %s2466_s17 = smov 128   ;;  %s2468_s18 = smov 8  }
  0x25   : > { %s2491_s3 = sld [smem:[#allocation24_spill]]  ;;  %p32_p10 = scmp.eq.s32.totalorder %s31_s15, 0 }
  0x26   : > { %p41_p13 = scmp.ne.s32.totalorder %s2041_s26, %s2037_s25  ;;  %p42_p0 = scmp.eq.s32.totalorder %s2045_s27, 0 }
  0x27   : > { %p1773_p3 = scmp.lt.s32.totalorder %s2045_s27, 2  ;;  %s2467_s23 = sand.u32 1, %s2041_s26  }
  0x28   : > { %s2180_s21 = scalar_select %p32_p10, %s2041_s26, %s34_s14  }
  0x29   : > { %p43_p5 = por %p42_p0, %p41_p13  ;;  %p2184_p7 = por %p207_p2, %p41_p13 }
  0x2a   : > { %2492 = sst [smem:[#allocation22_spill]] %s2180_s21  ;;  %s2190_s29 = sshll.u32 %s2045_s27, 7 }
  0x2b   : > { %1753 = dma.hbm_to_vmem [thread:$0]  (!%p2152_p11), %s2491_s3, 1536, %s233_s11, [#allocation11], %s2466_s17, %s2466_s17, %s2468_s18  }
  0x2c   : > { %s2493_s22 = scalar_select %p2184_p7, 1, 0 }
  0x2d   : > { %s2194_s10 = sshll.u32 %s2467_s23, 3  ;;  %p2196_p9 = pnand %p1773_p3, %p43_p5 }
  0x2e   : > { %s283_s14 = sand.u32 1, %s2045_s27   ;;  %s2205_s19 = scalar_lea.hbm %s2459_s1, %s2190_s29 }
  0x2f   : > { %s287_s20 = scalar_lea.vmem [#allocation7], %s2194_s10  ;;  %s2208_s23 = scalar_lea.sflag [#allocation8], %s283_s14 }
  0x30   : > { %s294_s17 = sshll.u32 %s287_s20, 4  ;;  %s1863_s18 = scalar_lea.hbm %s2205_s19, 128  ;;  %s295_s17 = int_to_ptr.vmem [resolvable:$true] %s294_s17 }
  0x31   : > { %p1864_p2 = scmp.ne.s32.totalorder %s2205_s19, %s1863_s18  ;;  %p2214_p10 = pneg %p2196_p9 }
  0x32   : > { %s1868_s21 = scalar_lea.hbm %s2459_s1, 256  ;;  %p1869_p3 = scmp.lt.s32.totalorder %s2205_s19, %s2459_s1 }
  0x33   : > { %p1866_p13 = pnand %p2214_p10, %p1864_p2  ;;  %p1870_p5 = scmp.lt.s32.totalorder %s1868_s21, %s1863_s18 }
  0x35   : > { %p1867_p0 = pneg %p1866_p13  ;;  %p1871_p1 = por %p1870_p5, %p1869_p3 }
  0x37   : > { %p1872_p12 = pnand %p1871_p1, %p1867_p0 }
  0x39   : > { %1875 = shalt.err (!%p1872_p12)
}
  0x3a   : > { %s1876_s14 = scalar_lea.vmem %s295_s17, 128  ;;  %s2050_s27 = smov [#allocation7]  }
  0x3b   : > { %p1877_p6 = scmp.ne.s32.totalorder %s295_s17, %s1876_s14  ;;  %s1881_s8 = sshll.u32 %s2050_s27, 4  ;;  %s1882_s8 = int_to_ptr.vmem [resolvable:$false] %s1881_s8 }
  0x3c   : > { %s1883_s24 = scalar_lea.vmem %s1882_s8, 256  ;;  %p1884_p2 = scmp.lt.s32.totalorder %s295_s17, %s1882_s8 }
  0x3d   : > { %p1879_p7 = pnand %p1877_p6, %p2214_p10  ;;  %p1885_p13 = scmp.lt.s32.totalorder %s1883_s24, %s1876_s14 }
  0x3f   : > { %p1880_p4 = pneg %p1879_p7  ;;  %p1886_p8 = por %p1885_p13, %p1884_p2 }
  0x41   : > { %p1887_p11 = pnand %p1886_p8, %p1880_p4 }
  0x43   : > { %1890 = shalt.err (!%p1887_p11)
}
  0x44   : > { %1763 = dma.hbm_to_vmem [thread:$0]  (!%p2196_p9), %s2205_s19, 128, %s295_s17, %s2208_s23  }
  0x45   : > { %s2051_s13 = smov [#allocation12]   ;;  %p2496_p6 = scmp.ne.s32.totalorder %s2489_s12, 0 }
  0x46   : > { %s248_s18 = sshll.u32 %s2051_s13, 4  ;;  %s249_s18 = int_to_ptr.vmem [resolvable:$true] %s248_s18 }
  0x47   : > { %s1902_s21 = scalar_lea.vmem %s249_s18, 512  ;;  %p2497_p12 = pneg %p2496_p6 }
  0x48   : > { %p1903_p1 = scmp.ne.s32.totalorder %s249_s18, %s1902_s21  ;;  %p1910_p3 = scmp.lt.s32.totalorder %s249_s18, %s249_s18 }
  0x49   : > { %p1911_p5 = scmp.lt.s32.totalorder %s1902_s21, %s1902_s21 }
  0x4a   : > { %p1905_p7 = pnand %p1903_p1, %p2497_p12 }
  0x4b   : > { %p1912_p2 = por %p1911_p5, %p1910_p3 }
  0x4c   : > { %p1906_p0 = pneg %p1905_p7 }
  0x4e   : > { %p1913_p4 = pnand %p1912_p2, %p1906_p0 }
  0x50   : > { %1916 = shalt.err (!%p1913_p4)
}
  0x51   : > { %s2498_s24 = smov 8   ;;  %s2499_s27 = smov 128  }
  0x52   : > { %1756 = dma.hbm_to_vmem [thread:$0]  (!%p2496_p6), %s2463_s5, 512, %s249_s18, [#allocation11], %s2499_s27, %s2499_s27, %s2498_s24  }
  0x53   : > { %s2500_s0 = sld [smem:[#allocation23_spill]]  ;;  %s269_s12 = scalar_lea.vmem [#allocation4], %s2194_s10 }
  0x54   : > { %s276_s20 = sshll.u32 %s269_s12, 4  ;;  %s2501_s14 = sand.u32 1, %s2041_s26   ;;  %s277_s20 = int_to_ptr.vmem [resolvable:$true] %s276_s20 }
  0x55   : > { %s266_s13 = scalar_lea.sflag [#allocation5], %s2501_s14 }
  0x59   : > { %s2248_s16 = scalar_lea.hbm %s2500_s0, %s2190_s29  ;;  %s1922_s24 = scalar_lea.hbm %s2500_s0, 256 }
  0x5a   : > { %s1917_s21 = scalar_lea.hbm %s2248_s16, 128  ;;  %p1923_p1 = scmp.lt.s32.totalorder %s2248_s16, %s2500_s0 }
  0x5b   : > { %p1918_p8 = scmp.ne.s32.totalorder %s2248_s16, %s1917_s21  ;;  %p1924_p6 = scmp.lt.s32.totalorder %s1922_s24, %s1917_s21 }
  0x5d   : > { %p1920_p11 = pnand %p1918_p8, %p2214_p10  ;;  %p1925_p12 = por %p1924_p6, %p1923_p1 }
  0x5f   : > { %p1921_p13 = pneg %p1920_p11 }
  0x61   : > { %p1926_p7 = pnand %p1925_p12, %p1921_p13 }
  0x63   : > { %1929 = shalt.err (!%p1926_p7)
}
  0x64   : > { %s1930_s19 = scalar_lea.vmem %s277_s20, 128  ;;  %s2052_s15 = smov [#allocation4]  }
  0x65   : > { %p1931_p0 = scmp.ne.s32.totalorder %s277_s20, %s1930_s19  ;;  %s1935_s12 = sshll.u32 %s2052_s15, 4  ;;  %s1936_s12 = int_to_ptr.vmem [resolvable:$false] %s1935_s12 }
  0x66   : > { %s1937_s14 = scalar_lea.vmem %s1936_s12, 256  ;;  %p1938_p2 = scmp.lt.s32.totalorder %s277_s20, %s1936_s12 }
  0x67   : > { %p1933_p3 = pnand %p1931_p0, %p2214_p10  ;;  %p1939_p4 = scmp.lt.s32.totalorder %s1937_s14, %s1930_s19 }
  0x69   : > { %p1934_p5 = pneg %p1933_p3  ;;  %p1940_p8 = por %p1939_p4, %p1938_p2 }
  0x6b   : > { %p1941_p11 = pnand %p1940_p8, %p1934_p5 }
  0x6d   : > { %1944 = shalt.err (!%p1941_p11)
}
  0x6e   : > { %1760 = dma.hbm_to_vmem [thread:$0]  (!%p2196_p9), %s2248_s16, 128, %s277_s20, %s266_s13  }
  0x6f   : > { %s310_s18 = scalar_lea.hbm %s2460_s2, %s2190_s29  ;;  %s305_s24 = scalar_lea.vmem [#allocation9], %s2194_s10 }
  0x70   : > { %s312_s27 = sshll.u32 %s305_s24, 4  ;;  %s1945_s17 = scalar_lea.hbm %s310_s18, 128  ;;  %s313_s27 = int_to_ptr.vmem [resolvable:$true] %s312_s27 }
  0x71   : > { %p1946_p13 = scmp.ne.s32.totalorder %s310_s18, %s1945_s17  ;;  %s1950_s12 = scalar_lea.hbm %s2460_s2, 256 }
  0x72   : > { %p1951_p12 = scmp.lt.s32.totalorder %s310_s18, %s2460_s2  ;;  %p1952_p7 = scmp.lt.s32.totalorder %s1950_s12, %s1945_s17 }
  0x73   : > { %p1948_p1 = pnand %p1946_p13, %p2214_p10 }
  0x74   : > { %p1953_p0 = por %p1952_p7, %p1951_p12 }
  0x75   : > { %p1949_p6 = pneg %p1948_p1 }
  0x77   : > { %p1954_p3 = pnand %p1953_p0, %p1949_p6 }
  0x79   : > { %1957 = shalt.err (!%p1954_p3)
}
  0x7a   : > { %s1958_s29 = scalar_lea.vmem %s313_s27, 128  ;;  %s2053_s10 = smov [#allocation9]  }
  0x7b   : > { %p1959_p5 = scmp.ne.s32.totalorder %s313_s27, %s1958_s29  ;;  %s1963_s16 = sshll.u32 %s2053_s10, 4  ;;  %s1964_s16 = int_to_ptr.vmem [resolvable:$false] %s1963_s16 }
  0x7c   : > { %s1965_s20 = scalar_lea.vmem %s1964_s16, 256  ;;  %p1966_p8 = scmp.lt.s32.totalorder %s313_s27, %s1964_s16 }
  0x7d   : > { %p1961_p2 = pnand %p1959_p5, %p2214_p10  ;;  %p1967_p11 = scmp.lt.s32.totalorder %s1965_s20, %s1958_s29 }
  0x7f   : > { %p1962_p4 = pneg %p1961_p2  ;;  %p1968_p13 = por %p1967_p11, %p1966_p8 }
  0x81   : > { %p1969_p1 = pnand %p1968_p13, %p1962_p4 }
  0x83   : > { %1972 = shalt.err (!%p1969_p1)
}
  0x84   : > { %1766 = dma.hbm_to_vmem [thread:$0]  (!%p2196_p9), %s310_s18, 128, %s313_s27, %s2208_s23  }
  0x85   : > { %p2502_p6 = scmp.ne.s32.totalorder %s2488_s9, 0 }
  0x86   : > { %s2290_s0 = sand.u32 (!%p2502_p6), 1, %s2037_s25   ;;  %p2503_p10 = scmp.ne.s32.totalorder (!%p2502_p6), %s2485_s30, 0 }
  0x87   : > { %321 = sbr.rel (%p2502_p6) target bundleno = 1517 (0x5ed), region = 48  ;;  %s2293_s3 = sshll.u32 (!%p2502_p6), %s2290_s0, 3 }
  0x88   : > { %s324_s13 = scalar_lea.sflag (!%p2502_p6), [#allocation5], %s2290_s0  ;;  %s327_s21 = scalar_lea.vmem (!%p2502_p6), [#allocation4], %s2293_s3 }
  0x8c   : > { %2016 = dma.done.wait (%p2503_p10), %s324_s13, 128  }
  0x8d   : > { %2018 = vsyncadd (%p2503_p10), %s324_s13, 4294967168  ;;  %s332_s9 = sand.u32 1, %s2124_s28   ;;  %s336_s11 = scalar_lea.vmem [#allocation7], %s2293_s3 }
  0x8e   : > { %s333_s23 = scalar_lea.sflag [#allocation8], %s332_s9 }
  0x8f   : > { %2020 = dma.done.wait (%p2503_p10), %s333_s23, 256  }
  0x90   : > { %2022 = vsyncadd (%p2503_p10), %s333_s23, 4294967040  ;;  %s345_s8 = scalar_lea.vmem [#allocation9], %s2293_s3  ;;  %p2504_p9 = scmp.eq.s32.totalorder %s2124_s28, 0 }
  0x92   : > { %2024 = dma.done.wait (%p2504_p9), [#allocation11], 2048   ;;  %p2505_p12 = pmov %p2504_p9 }
  0x93   : > { %v2054_v0 = vmov 0.0   ;;  %vm2055_vm0 = vmmov 0   ;;  %v486_v1 = vld [vmem:[#allocation10 + $0x38] sm:$0xff]  ;;  %v485_v3 = vld [vmem:[#allocation10 + $0x30] sm:$0xff]  ;;  %v484_v5 = vld [vmem:[#allocation10 + $0x28] sm:$0xff]  ;;  %vm406_vm1 = vcmask 261120  }
  0x94   : > { %2026 = vsyncadd (%p2505_p12), [#allocation11], 4294965248  ;;  %1661 = vmatprep.subr.mxu1 %v2054_v0  ;;  %1650 = vmatprep.subr.mxu0 %v2054_v0  ;;  %v398_v2 = vld [vmem:[#allocation10 + $0x18] sm:$0xff]  ;;  %v397_v4 = vld [vmem:[#allocation10 + $0x10] sm:$0xff]  ;;  %vm686_vm2 = vcmask 64512   ;;  %s2056_s17 = smov 112  }
  0x95   : > { %1669 = vmatprep.mubr.msk.f32.mxu1 %vm2055_vm0, %v2054_v0  ;;  %1658 = vmatprep.mubr.msk.f32.mxu0 %vm2055_vm0, %v2054_v0  ;;  %v396_v6 = vld [vmem:[#allocation10 + $0x8] sm:$0xff]  ;;  %v483_v7 = vld [vmem:[#allocation10 + $0x20] sm:$0xff]  ;;  %v394_v10 = vld [vmem:[%s327_s21] sm:$0xff]  ;;  %s2057_s19 = smov 120   ;;  %s2058_s15 = smov 104   ;;  %vm1324_vm3 = vcmask 130112  }
  0x96   : > { %1662 = vmatpush3.msra.mxu1 %v486_v1  ;;  %1651 = vmatpush3.msra.mxu0 %v398_v2  ;;  %v395_v8 = vld [vmem:[#allocation10] sm:$0xff]  ;;  %v1591_v11 = vld [vmem:[%s2462_s4 + $0x1] ss:$0 sm:$0xff]  ;;  %v1588_v12 = vld [vmem:[%s2462_s4] ss:$0 sm:$0xff]  ;;  %s2059_s29 = smov 8  }
  0x97   : > { %1663 = vmatprep.subr.mxu1 %v2054_v0  ;;  %1652 = vmatprep.subr.mxu0 %v2054_v0  ;;  %v481_v9 = vld [vmem:[%s336_s11] sm:$0xff]  ;;  %v575_v19 = vld [vmem:[#allocation10 + $0x58] sm:$0xff]  ;;  %v574_v20 = vld [vmem:[#allocation10 + $0x50] sm:$0xff]  ;;  %s2060_s10 = smov 16   ;;  %s2061_s16 = smov 24   ;;  %vm1330_vm4 = vcmask 195712  }
  0x98   : > { %1664 = vmatpush3.msra.mxu1 %v485_v3  ;;  %1653 = vmatpush3.msra.mxu0 %v397_v4  ;;  %v573_v21 = vld [vmem:[#allocation10 + $0x48] sm:$0xff]  ;;  %v572_v22 = vld [vmem:[#allocation10 + $0x40] sm:$0xff]  ;;  %v570_v24 = vld [vmem:[%s345_s8] sm:$0xff]  ;;  %vm1336_vm5 = vcmask 261312   ;;  %s1611_s21 = sshll.u32 %s2124_s28, 7  ;;  %s393_s9 = scalar_lea.vmem [#allocation13], %s2293_s3 }
  0x99   : > { %1665 = vmatprep.subr.mxu1 %v2054_v0  ;;  %1654 = vmatprep.subr.mxu0 %v2054_v0  ;;  %v1594_v32 = vld [vmem:[%s2462_s4 + $0x2] ss:$0 sm:$0xff]  ;;  %s1438_s23 = sshll.u32 %s393_s9, 4  ;;  %s2420_s30 = scalar_lea.hbm %s2465_s7, %s1611_s21  ;;  %s1439_s23 = int_to_ptr.vmem [resolvable:$true] %s1438_s23 }
  0x9a   : > { %1666 = vmatpush3.msra.mxu1 %v484_v5  ;;  %1655 = vmatpush3.msra.mxu0 %v396_v6  ;;  %s1425_s18 = scalar_lea.sflag [#allocation6], %s2290_s0  ;;  %s1973_s24 = scalar_lea.vmem %s1439_s23, 128 }
  0x9b   : > { %1667 = vmatprep.subr.mxu1 %v2054_v0  ;;  %1656 = vmatprep.subr.mxu0 %v2054_v0  ;;  %p1974_p7 = scmp.ne.s32.totalorder %s1439_s23, %s1973_s24  ;;  %p2506_p0 = scmp.ne.s32.totalorder %s2493_s22, 0 }
  0x9c   : > { %1668 = vmatpush3.msra.mxu1 %v483_v7  ;;  %1657 = vmatpush3.msra.mxu0 %v395_v8  ;;  %s2062_s28 = smov [#allocation13]  }
  0x9d   : > { %1670 = vmatmul.mubr.msk.f32.vlgmr.msra.gmra.mxu1 %vm406_vm1, %v481_v9  ;;  %1659 = vmatmul.mubr.msk.f32.vlgmr.msra.gmra.mxu0 %vm406_vm1, %v394_v10  ;;  %p1975_p3 = pnand %p1974_p7, %p2506_p0  ;;  %s1977_s3 = sshll.u32 %s2062_s28, 4  ;;  %s1978_s3 = int_to_ptr.vmem [resolvable:$false] %s1977_s3 }
  0x9e   : > { %1683 = vmatprep.subr.mxu1 %v2054_v0  ;;  %1685 = vmatprep.mubr.msk.f32.mxu1 %vm2055_vm0, %v2054_v0  ;;  %s1979_s27 = scalar_lea.vmem %s1978_s3, 256  ;;  %p1980_p2 = scmp.lt.s32.totalorder %s1439_s23, %s1978_s3 }
  0x9f   : > { %1672 = vmatprep.subr.mxu0 %v2054_v0  ;;  %1680 = vmatprep.mubr.msk.f32.mxu0 %vm2055_vm0, %v2054_v0  ;;  %p1976_p5 = pneg %p1975_p3  ;;  %p1981_p4 = scmp.lt.s32.totalorder %s1979_s27, %s1973_s24 }
  0xa0   : > { %1673 = vmatpush3.msra.mxu0 %v575_v19 }
  0xa1   : > { %1674 = vmatprep.subr.mxu0 %v2054_v0  ;;  %p1982_p8 = por %p1981_p4, %p1980_p2 }
  0xa2   : > { %1675 = vmatpush3.msra.mxu0 %v574_v20 }
  0xa3   : > { %1676 = vmatprep.subr.mxu0 %v2054_v0  ;;  %p1983_p11 = pnand %p1982_p8, %p1976_p5 }
  0xa4   : > { %1677 = vmatpush3.msra.mxu0 %v573_v21 }
  0xa5   : > { %1678 = vmatprep.subr.mxu0 %v2054_v0 }
  0xa6   : > { %1679 = vmatpush3.msra.mxu0 %v572_v22 }
  0xa7   : > { %1681 = vmatmul.mubr.msk.f32.vlgmr.msra.gmra.mxu0 %vm406_vm1, %v570_v24  ;;  %1703 = vmatprep.subr.mxu0 %v2054_v0  ;;  %v1341_v24 = vld [vmem:[#allocation12 + $0x10] sm:$0xff] }
  0xa8   : > { %1705 = vmatprep.mubr.msk.f32.mxu0 %vm2055_vm0, %v2054_v0 }
 0x15d   : > { %v564_v13 = vpop.f32.mrf.mxu1  ;;  %v476_v14 = vpop.f32.mrf.mxu0 }
 0x15e   : > { %v565_v15 = vadd.f32 %v1591_v11, %v564_v13  ;;  %v477_v16 = vadd.f32 %v1588_v12, %v476_v14 }
 0x15f   : > { %v1671_v17 = vpop.f32.mrf.mxu1  ;;  %v1660_v18 = vpop.f32.mrf.mxu0 }
 0x160   : > { %569 = vst.msk [vmem:[#allocation2 + $0x8] sm:$0xff] %vm406_vm1, %v565_v15  ;;  %480 = vst.msk [vmem:[#allocation2] sm:$0xff] %vm406_vm1, %v477_v16 }
 0x167   : > { %v667_v23 = vld [vmem:[#allocation2 + $0x8] sm:$0xff]  ;;  %v659_v25 = vld [vmem:[#allocation2] sm:$0xff]  ;;  %v653_v33 = vpop.f32.mrf.mxu0 }
 0x168   : > { %671 = vrot.lane.b32.xlu1 %v667_v23, %s2056_s17  ;;  %669 = vrot.lane.b32.xlu0 %v667_v23, %s2057_s19  ;;  %v654_v34 = vadd.f32 %v1594_v32, %v653_v33 }
 0x169   : > { %1684 = vmatpush3.xpose.msk.msra.mxu1 %vm686_vm2, %v667_v23  ;;  %v1682_v36 = vpop.f32.mrf.mxu0 }
 0x16a   : > { %1688 = vmatprep.subr.mxu1 %v2054_v0  ;;  %658 = vst.msk [vmem:[#allocation2 + $0x10] sm:$0xff] %vm406_vm1, %v654_v34  ;;  %v1608_v36 = vld [vmem:[%s2464_s6] ss:$0 sm:$0xff] }
 0x16c   : > { %1686 = vmatmul.mubr.msk.f32.vlgmr.msra.gmra.mxu1 %vm686_vm2, %v659_v25  ;;  %663 = vrot.lane.b32.xlu1 %v659_v25, %s2056_s17 }
 0x16d   : > { %661 = vrot.lane.b32.xlu0 %v659_v25, %s2057_s19  ;;  %1690 = vmatprep.mubr.msk.f32.mxu1 %vm2055_vm0, %v2054_v0 }
 0x170   : > { %665 = vrot.lane.b32.xlu1 %v659_v25, %s2058_s15  ;;  %v1340_v25 = vld [vmem:[#allocation12 + $0x8] sm:$0xff] }
 0x171   : > { %673 = vrot.lane.b32.xlu0 %v667_v23, %s2058_s15  ;;  %v675_v39 = vld [vmem:[#allocation2 + $0x10] sm:$0xff]  ;;  %v1342_v23 = vld [vmem:[#allocation12 + $0x18] sm:$0xff] }
 0x172   : > { %1704 = vmatpush3.msra.mxu0 %v675_v39 }
 0x173   : > { %1713 = vmatprep.subr.mxu0 %v2054_v0 }
 0x1da   : > { %v670_v26 = vpop.permute.xlu0 %669  ;;  %v672_v27 = vpop.permute.xlu1 %671 }
 0x1db   : > { %1689 = vmatpush3.xpose.msk.msra.mxu1 %vm686_vm2, %v670_v26 }
 0x1dc   : > { %1693 = vmatprep.subr.mxu1 %v2054_v0 }
 0x1de   : > { %v664_v29 = vpop.permute.xlu1 %663 }
 0x1df   : > { %v662_v28 = vpop.permute.xlu0 %661 }
 0x1e0   : > { %1691 = vmatmul.mubr.msk.f32.vlgmr.msra.gmra.mxu1 %vm686_vm2, %v662_v28 }
 0x1e1   : > { %1694 = vmatpush3.xpose.msk.msra.mxu1 %vm686_vm2, %v672_v27  ;;  %1695 = vmatprep.mubr.msk.f32.mxu1 %vm2055_vm0, %v2054_v0  ;;  %v1339_v27 = vld [vmem:[#allocation12] sm:$0xff] }
 0x1e2   : > { %1698 = vmatprep.subr.mxu1 %v2054_v0  ;;  %v666_v31 = vpop.permute.xlu1 %665 }
 0x1e3   : > { %v674_v30 = vpop.permute.xlu0 %673 }
 0x1e4   : > { %1696 = vmatmul.mubr.msk.f32.vlgmr.msra.gmra.mxu1 %vm686_vm2, %v664_v29 }
 0x1e5   : > { %1699 = vmatpush3.xpose.msk.msra.mxu1 %vm686_vm2, %v674_v30  ;;  %1700 = vmatprep.mubr.msk.f32.mxu1 %vm2055_vm0, %v2054_v0 }
 0x1e6   : > { %1708 = vmatprep.subr.mxu1 %v2054_v0 }
 0x1e8   : > { %1701 = vmatmul.mubr.msk.f32.vlgmr.msra.gmra.mxu1 %vm686_vm2, %v666_v31 }
 0x1e9   : > { %1710 = vmatprep.mubr.msk.f32.mxu1 %vm2055_vm0, %v2054_v0 }
 0x22c   : > { %v757_v35 = vpop.f32.mrf.mxu1 }
 0x22d   : > { %v983_v37 = vsel %vm686_vm2, %v757_v35, -inf }
 0x22e   : > { %984 = vmax.xlane.f32.xlu0 %v983_v37  ;;  %v1687_v38 = vpop.f32.mrf.mxu1 }
 0x2a0   : > { %v831_v40 = vpop.f32.mrf.mxu1 }
 0x2a1   : > { %v986_v41 = vsel %vm686_vm2, %v831_v40, -inf }
 0x2a2   : > { %987 = vmax.xlane.f32.xlu1 %v986_v41  ;;  %v1692_v42 = vpop.f32.mrf.mxu1 }
 0x2a4   : > { %v905_v43 = vpop.f32.mrf.mxu1 }
 0x2a5   : > { %v989_v44 = vsel %vm686_vm2, %v905_v43, -inf }
 0x2a6   : > { %990 = vmax.xlane.f32.xlu0 %v989_v44  ;;  %v1697_v45 = vpop.f32.mrf.mxu1 }
 0x2a8   : > { %v979_v46 = vpop.f32.mrf.mxu1 }
 0x2a9   : > { %v992_v47 = vsel %vm686_vm2, %v979_v46, -inf }
 0x2aa   : > { %993 = vmax.xlane.f32.xlu0 %v992_v47  ;;  %v1702_v48 = vpop.f32.mrf.mxu1 }
 0x2b3   : > { %677 = vrot.lane.b32.xlu1 %v675_v39, %s2057_s19 }
 0x2b7   : > { %v985_v49 = vpop.xlane.xlu0 %984 }
 0x2b8   : > { %v995_v50 = vsub.f32 %v757_v35, %v985_v49 }
 0x2ba   : > { %v999_v51 = vmul.f32 1.442695, %v995_v50 }
 0x2bc   : > { %1821 = vpow2.f32 %v999_v51 }
 0x2c9   : > { %v1822_v52 = vpop.eup %1821 }
 0x2ca   : > { %v1007_v53 = vsel %vm686_vm2, %v1822_v52, 0.0 }
 0x2d7   : > { %1008 = vadd.xlane.f32.xlu1 %v1007_v53 }
 0x32b   : > { %v988_v54 = vpop.xlane.xlu1 %987 }
 0x32c   : > { %v996_v55 = vsub.f32 %v831_v40, %v988_v54 }
 0x32e   : > { %v1001_v56 = vmul.f32 1.442695, %v996_v55 }
 0x32f   : > { %v991_v57 = vpop.xlane.xlu0 %990  ;;  %v678_v58 = vpop.permute.xlu1 %677 }
 0x330   : > { %1823 = vpow2.f32 %v1001_v56  ;;  %v997_v59 = vsub.f32 %v905_v43, %v991_v57  ;;  %1709 = vmatpush3.msra.mxu1 %v678_v58 }
 0x331   : > { %1718 = vmatprep.subr.mxu1 %v2054_v0 }
 0x332   : > { %v1003_v60 = vmul.f32 1.442695, %v997_v59 }
 0x333   : > { %v994_v61 = vpop.xlane.xlu0 %993 }
 0x334   : > { %1825 = vpow2.f32 %v1003_v60  ;;  %v998_v62 = vsub.f32 %v979_v46, %v994_v61 }
 0x336   : > { %v1005_v63 = vmul.f32 1.442695, %v998_v62 }
 0x338   : > { %1827 = vpow2.f32 %v1005_v63 }
 0x33d   : > { %v1824_v1 = vpop.eup %1823 }
 0x33e   : > { %v1010_v2 = vsel %vm686_vm2, %v1824_v1, 0.0 }
 0x33f   : > { %1011 = vadd.xlane.f32.xlu0 %v1010_v2 }
 0x341   : > { %v1826_v3 = vpop.eup %1825 }
 0x342   : > { %v1013_v4 = vsel %vm686_vm2, %v1826_v3, 0.0 }
 0x343   : > { %1014 = vadd.xlane.f32.xlu1 %v1013_v4 }
 0x345   : > { %v1828_v5 = vpop.eup %1827 }
 0x346   : > { %v1016_v6 = vsel %vm686_vm2, %v1828_v5, 0.0 }
 0x347   : > { %1017 = vadd.xlane.f32.xlu0 %v1016_v6 }
 0x354   : > { %683 = vrot.lane.b32.xlu1 %v675_v39, %s2058_s15 }
 0x35d   : > { %680 = vrot.lane.b32.xlu0 %v675_v39, %s2056_s17 }
 0x360   : > { %v1009_v7 = vpop.xlane.xlu1 %1008 }
 0x361   : > { %1829 = vrcp.f32 %v1009_v7 }
 0x36e   : > { %v1830_v8 = vpop.eup %1829 }
 0x36f   : > { %v1023_v9 = vmul.f32 %v1830_v8, %v1822_v52 }
 0x371   : > { %1706 = vmatmul.mubr.msk.f32.vlgmr.msra.gmra.mxu0 %vm686_vm2, %v1023_v9 }
 0x372   : > { %1715 = vmatprep.mubr.msk.f32.mxu0 %vm2055_vm0, %v2054_v0 }
 0x3c8   : > { %v1012_v10 = vpop.xlane.xlu0 %1011 }
 0x3c9   : > { %1831 = vrcp.f32 %v1012_v10 }
 0x3cc   : > { %v1015_v11 = vpop.xlane.xlu1 %1014 }
 0x3cd   : > { %1833 = vrcp.f32 %v1015_v11 }
 0x3d0   : > { %v1018_v12 = vpop.xlane.xlu0 %1017  ;;  %v684_v16 = vpop.permute.xlu1 %683 }
 0x3d1   : > { %1835 = vrcp.f32 %v1018_v12 }
 0x3d4   : > { %v681_v13 = vpop.permute.xlu0 %680 }
 0x3d5   : > { %1714 = vmatpush3.msra.mxu0 %v681_v13 }
 0x3d6   : > { %v1832_v14 = vpop.eup %1831  ;;  %1723 = vmatprep.subr.mxu0 %v2054_v0 }
 0x3d7   : > { %v1024_v15 = vmul.f32 %v1832_v14, %v1824_v1 }
 0x3d9   : > { %1711 = vmatmul.mubr.msk.f32.vlgmr.msra.gmra.mxu1 %vm686_vm2, %v1024_v15 }
 0x3da   : > { %v1834_v17 = vpop.eup %1833  ;;  %1719 = vmatpush3.msra.mxu1 %v684_v16  ;;  %1720 = vmatprep.mubr.msk.f32.mxu1 %vm2055_vm0, %v2054_v0 }
 0x3db   : > { %v1025_v18 = vmul.f32 %v1834_v17, %v1826_v3 }
 0x3dd   : > { %1716 = vmatmul.mubr.msk.f32.vlgmr.msra.gmra.mxu0 %vm686_vm2, %v1025_v18 }
 0x3de   : > { %v1836_v19 = vpop.eup %1835  ;;  %1731 = vmatprep.mubr.msk.f32.mxu0 %vm2055_vm0, %v2054_v0  ;;  %1724 = vmatpush3.msra.mxu0 %v1342_v23 }
 0x3df   : > { %v1026_v20 = vmul.f32 %v1836_v19, %v1828_v5  ;;  %1725 = vmatprep.subr.mxu0 %v2054_v0 }
 0x3e0   : > { %1726 = vmatpush3.msra.mxu0 %v1341_v24 }
 0x3e1   : > { %1721 = vmatmul.mubr.msk.f32.vlgmr.msra.gmra.mxu1 %vm686_vm2, %v1026_v20  ;;  %1727 = vmatprep.subr.mxu0 %v2054_v0 }
 0x3e2   : > { %1728 = vmatpush3.msra.mxu0 %v1340_v25 }
 0x3e3   : > { %1729 = vmatprep.subr.mxu0 %v2054_v0 }
 0x3e4   : > { %1730 = vmatpush3.msra.mxu0 %v1339_v27 }
 0x431   : > { %v1096_v21 = vpop.f32.mrf.mxu0 }
 0x432   : > { %1319 = vst.msk [vmem:[#allocation3] sm:$0xff] %vm686_vm2, %v1096_v21 }
 0x433   : > { %v1707_v22 = vpop.f32.mrf.mxu0 }
 0x499   : > { %v1169_v26 = vpop.f32.mrf.mxu1 }
 0x49a   : > { %1321 = vrot.lane.b32.xlu1 %v1169_v26, %s2059_s29 }
 0x49b   : > { %v1712_v28 = vpop.f32.mrf.mxu1 }
 0x49d   : > { %v1242_v29 = vpop.f32.mrf.mxu0 }
 0x49e   : > { %1327 = vrot.lane.b32.xlu0 %v1242_v29, %s2060_s10 }
 0x49f   : > { %v1717_v30 = vpop.f32.mrf.mxu0 }
 0x4a1   : > { %v1315_v31 = vpop.f32.mrf.mxu1 }
 0x4a2   : > { %1333 = vrot.lane.b32.xlu1 %v1315_v31, %s2061_s16 }
 0x4a3   : > { %v1722_v32 = vpop.f32.mrf.mxu1 }
 0x50c   : > { %v1322_v33 = vpop.permute.xlu1 %1321 }
 0x50d   : > { %1325 = vst.msk [vmem:[#allocation3] sm:$0xff] %vm1324_vm3, %v1322_v33 }
 0x510   : > { %v1328_v34 = vpop.permute.xlu0 %1327 }
 0x511   : > { %1331 = vst.msk [vmem:[#allocation3] sm:$0xff] %vm1330_vm4, %v1328_v34 }
 0x514   : > { %v1334_v0 = vpop.permute.xlu1 %1333 }
 0x515   : > { %1337 = vst.msk [vmem:[#allocation3] sm:$0xff] %vm1336_vm5, %v1334_v0 }
 0x51c   : > { %v1338_v35 = vld [vmem:[#allocation3] sm:$0xff] }
 0x51d   : > { %1732 = vmatmul.mubr.msk.f32.vlgmr.msra.gmra.mxu0 %vm406_vm1, %v1338_v35 }
 0x5dd   : > { %v1419_v37 = vpop.f32.mrf.mxu0 }
 0x5de   : > { %v1420_v38 = vadd.f32 %v1608_v36, %v1419_v37 }
 0x5df   : > { %v1733_v39 = vpop.f32.mrf.mxu0 }
 0x5e0   : > { %1423 = vst.msk [vmem:[%s393_s9] sm:$0xff] %vm406_vm1, %v1420_v38 }
 0x5e1   : > { %1986 = shalt.err (!%p1983_p11)
}
 0x5e2   : > { %s1987_s17 = scalar_lea.hbm %s2420_s30, 128  ;;  %s1991_s15 = scalar_lea.hbm %s2465_s7, 256 }
 0x5e3   : > { %p1988_p13 = scmp.ne.s32.totalorder %s2420_s30, %s1987_s17  ;;  %p1992_p10 = scmp.lt.s32.totalorder %s2420_s30, %s2465_s7 }
 0x5e4   : > { %p1993_p9 = scmp.lt.s32.totalorder %s1991_s15, %s1987_s17 }
 0x5e5   : > { %p1989_p1 = pnand %p1988_p13, %p2506_p0 }
 0x5e6   : > { %p1994_p12 = por %p1993_p9, %p1992_p10 }
 0x5e7   : > { %p1990_p6 = pneg %p1989_p1 }
 0x5e9   : > { %p1995_p7 = pnand %p1994_p12, %p1990_p6 }
 0x5eb   : > { %1998 = shalt.err (!%p1995_p7)
}
 0x5ec   : > { %1748 = dma.vmem_to_hbm [thread:$0]  (%p2506_p0), %s1439_s23, 128, %s2420_s30, %s1425_s18  }
 0x5ed PF: > { %s2507_s29 = sld [smem:[#allocation18_spill]] }
 0x5ee   : > { %s2508_s10 = sld [smem:[#allocation20_spill]] }
 0x5ef   : > { %s2509_s16 = sld [smem:[#allocation19_spill]] }
 0x5f3   : > { %s1450_s20 = sand.u32 1, %s2507_s29  }
 0x5f4   : > { %p2510_p3 = scmp.ne.s32.totalorder %s2508_s10, 0  ;;  %s1451_s13 = scalar_lea.sflag [#allocation6], %s1450_s20 }
 0x5f5   : > { %p2511_p5 = scmp.ge.s32.totalorder %s2509_s16, 2 }
 0x5f7   : > { %p1768_p2 = pnand %p2511_p5, %p2510_p3 }
 0x5f9   : > { %p1769_p4 = pneg %p1768_p2 }
 0x5fb   : > { %2028 = dma.done.wait (%p1769_p4), %s1451_s13, 128  }
 0x5fc   : > { %2030 = vsyncadd (%p1769_p4), %s1451_s13, 4294967168  ;;  %s2512_s27 = sld [smem:[#allocation21_spill]]  ;;  %s2514_s24 = smov %s2037_s25 }
 0x5fd   : > { %s2513_s21 = sld [smem:[#allocation22_spill]]  ;;  %s2515_s25 = smov %s2041_s26 }
 0x602   : > { %p24_p8 = scmp.ge.s32.totalorder %s2512_s27, 4  }
 0x603   : > { %s2516_s26 = smov %s2513_s21 }
 0x604   :  { %26 = sbr.rel (!%p24_p8) target bundleno = 11 (0xb), region = 131 }
 0x609   :  { %1456 = vsyncpa [#allocation5], 1 }
 0x60a   :  { %1458 = vsyncpa [#allocation5 + $0x1], 1 }
 0x60b   :  { %1459 = vsyncpa [#allocation8], 1 }
 0x60c   :  { %1461 = vsyncpa [#allocation8 + $0x1], 1 }
 0x60d   :  { %1462 = vsyncpa [#allocation11], 1 }
 0x60e   :  { %1463 = vsyncpa [#allocation6], 1 }
 0x60f   :  { %1465 = vsyncpa [#allocation6 + $0x1], 1 }

</bundles_post_ra>
